<compile_context>
chip_gen: v6e
topology: v6e:2x2x1
jax: 0.10.0
libtpu: 0.0.40
codegen_flags: <defaults>
</compile_context>

<pallas_src>
import functools

import jax
import jax.numpy as jnp
from jax import lax
from jax.experimental import pallas as pl
from jax.experimental.pallas import tpu as pltpu


# ----------------------------- Pallas kernel ------------------------------- #
def sac_lstm_kernel(obs_ref, wih_ref, whh_ref, b_ref,
                    hw1_ref, hb1_ref, hw2_ref, hb2_ref, hwo_ref, hbo_ref,
                    sel_hc_ref, out_ref, *, seq_len, unroll):
    H = whh_ref.shape[0]
    TB = obs_ref.shape[0]
    bf16 = jnp.bfloat16
    dot = functools.partial(jnp.dot, preferred_element_type=jnp.float32)

    whh = whh_ref[...]                                   # (H, 4H) bf16, loaded once
    # Hoisted bias broadcast: computed once, reused every recurrent step.
    b_bcast = jnp.broadcast_to(b_ref[...], (TB, 4 * H))  # (TB, 4H) f32

    def gates(z, c):
        # z: (TB, 4H) pre-activations, gate order [i | f | g | o]. The i/f/o
        # columns were pre-scaled by 0.5 host-side, so ONE full-vreg tanh
        # yields all four gates:  sigmoid(x) = 0.5 * (tanh(x/2) + 1).
        t = jnp.tanh(z)                                  # single EUP pass
        i = 0.5 * (t[:, 0:H] + 1.0)
        f = 0.5 * (t[:, H:2 * H] + 1.0)
        g = t[:, 2 * H:3 * H]
        o = 0.5 * (t[:, 3 * H:4 * H] + 1.0)
        c_new = f * c + i * g                            # f32 VPU
        h_new = o * jnp.tanh(c_new)
        return h_new, c_new

    # t = 0: h0 = c0 = 0, so the recurrent term and the f*c term vanish.
    # TODO(synk): non-empty `state` (carry-in h/c) path is not implemented;
    # kernel matches the module's `if not state:` zero-init branch.
    z0 = dot(obs_ref[...].astype(bf16), wih_ref[...]) + b_bcast
    t0 = jnp.tanh(z0)
    c = (0.5 * (t0[:, 0:H] + 1.0)) * t0[:, 2 * H:3 * H]          # c1 = i0 * g0
    h = (0.5 * (t0[:, 3 * H:4 * H] + 1.0)) * jnp.tanh(c)         # h1 = o0 * tanh(c1)

    # t = 1 .. T-1: padded inputs are zero -> recurrent-only steps. Serial
    # dependency chain -> partial unroll only (no overlap to be gained).
    def step(_, carry):
        h, c = carry
        z = dot(h.astype(bf16), whh) + b_bcast
        return gates(z, c)

    h, c = lax.fori_loop(1, seq_len, step, (h, c), unroll=unroll)

    # Fused policy + Q heads: bf16 matmuls, f32 accumulation/bias/relu.
    y = jnp.maximum(dot(h.astype(bf16), hw1_ref[...]) + hb1_ref[...], 0.0)
    y = jnp.maximum(dot(y.astype(bf16), hw2_ref[...]) + hb2_ref[...], 0.0)
    packed = dot(y.astype(bf16), hwo_ref[...]) + hbo_ref[...]    # [policy | q | 0]

    # Single fused selector places h | c into their output lanes (one MXU push
    # instead of two), so the epilogue is one unmasked lane-dense store.
    hc = jnp.concatenate([h, c], axis=1)                         # (TB, 2H) f32
    packed = packed + dot(hc, sel_hc_ref[...])
    out_ref[...] = packed


# ------------------------------ Host wrapper -------------------------------- #
def sac_lstm_forward(obs, params, *, max_seq_len, batch_tile=256, unroll=8):
    """Mirrors SAC_LSTM_Model.forward with empty `state` (zero-init LSTM).

    obs: (B, D) float32 (the common RLlib path: 2-D obs, unsqueezed to seq
    len 1 and zero-padded to max_seq_len before the LSTM).
    Returns (policy_out (B, A), q_value (B,), new_state [h (1,B,H), c (1,B,H)]).
    """
    obs = obs.astype(jnp.float32)
    B, D = obs.shape
    (wih, whh, b,
     pw1, pb1, pw2, pb2, pwo, pbo,
     qw1, qb1, qw2, qb2, qwo, qbo) = params

    H = whh.shape[0]
    A = pwo.shape[1]
    F1 = pw1.shape[1]
    F2 = pw2.shape[1]
    out_w = max(128, ((A + 1 + 2 * H + 127) // 128) * 128)
    f32, bf16 = jnp.float32, jnp.bfloat16

    # ---- Pre-scale i/f/o gate columns by 0.5 (single-tanh gate trick). ----
    scale = jnp.concatenate([jnp.full((1, H), 0.5, f32),   # i
                             jnp.full((1, H), 0.5, f32),   # f
                             jnp.ones((1, H), f32),        # g (unscaled)
                             jnp.full((1, H), 0.5, f32)],  # o
                            axis=1)
    wih_s = (wih * scale).astype(bf16)
    whh_s = (whh * scale).astype(bf16)
    b_s = (b * scale).astype(f32)

    # ---- Fuse the two MLP heads (policy | q); bf16 weights, f32 biases. ----
    hw1 = jnp.concatenate([pw1, qw1], axis=1).astype(bf16)               # (H, 2F1)
    hb1 = jnp.concatenate([pb1, qb1], axis=1).astype(f32)                # (1, 2F1)
    hw2 = jnp.block([[pw2, jnp.zeros((F1, F2), f32)],
                     [jnp.zeros((F1, F2), f32), qw2]]).astype(bf16)      # (2F1, 2F2)
    hb2 = jnp.concatenate([pb2, qb2], axis=1).astype(f32)                # (1, 2F2)
    hwo = jnp.zeros((2 * F2, out_w), f32)
    hwo = hwo.at[:F2, :A].set(pwo).at[F2:, A:A + 1].set(qwo).astype(bf16)
    hbo = jnp.zeros((1, out_w), f32)
    hbo = hbo.at[:, :A].set(pbo).at[:, A:A + 1].set(qbo)

    # ---- Single fused selector placing h|c into the packed output lanes. ----
    eye_h = jnp.eye(H, dtype=f32)
    sel_hc = jnp.zeros((2 * H, out_w), f32)
    sel_hc = sel_hc.at[:H, A + 1:A + 1 + H].set(eye_h)
    sel_hc = sel_hc.at[H:, A + 1 + H:A + 1 + 2 * H].set(eye_h)

    # ---- Batch padding / B-tile grid. ----
    b8 = ((B + 7) // 8) * 8                   # sublane-aligned (unmasked ld/st)
    tb = min(b8, batch_tile)
    Bp = ((b8 + tb - 1) // tb) * tb
    obs_p = jnp.zeros((Bp, D), f32).at[:B].set(obs)
    n_tiles = Bp // tb

    kern = functools.partial(sac_lstm_kernel, seq_len=max_seq_len,
                             unroll=min(unroll, max(1, max_seq_len - 1)))
    const = lambda i: (0, 0)
    packed = pl.pallas_call(
        kern,
        out_shape=jax.ShapeDtypeStruct((Bp, out_w), f32),
        grid=(n_tiles,),
        in_specs=[
            pl.BlockSpec((tb, D), lambda i: (i, 0)),          # obs
            pl.BlockSpec((D, 4 * H), const),                  # wih (bf16)
            pl.BlockSpec((H, 4 * H), const),                  # whh (bf16)
            pl.BlockSpec((1, 4 * H), const),                  # b
            pl.BlockSpec((H, 2 * F1), const),                 # hw1
            pl.BlockSpec((1, 2 * F1), const),                 # hb1
            pl.BlockSpec((2 * F1, 2 * F2), const),            # hw2
            pl.BlockSpec((1, 2 * F2), const),                 # hb2
            pl.BlockSpec((2 * F2, out_w), const),             # hwo
            pl.BlockSpec((1, out_w), const),                  # hbo
            pl.BlockSpec((2 * H, out_w), const),              # sel_hc
        ],
        out_specs=pl.BlockSpec((tb, out_w), lambda i: (i, 0)),
        compiler_params=pltpu.CompilerParams(
            dimension_semantics=("parallel",)),
    )(obs_p, wih_s, whh_s, b_s, hw1, hb1, hw2, hb2, hwo, hbo, sel_hc)

    packed = packed[:B]
    policy = packed[:, :A]
    q = packed[:, A]
    h = packed[:, A + 1:A + 1 + H]
    c = packed[:, A + 1 + H:A + 1 + 2 * H]
    new_state = [h[None, ...], c[None, ...]]       # (1, B, H) like nn.LSTM state
    return policy, q, new_state


# --------------------------- Deterministic params --------------------------- #
def init_params(key, obs_dim, lstm_cell_size, fcnet_hiddens, num_outputs):
    ks = jax.random.split(key, 9)

    def w(k, shape, scale=0.1):
        return (scale * jax.random.normal(k, shape)).astype(jnp.float32)

    H = lstm_cell_size
    h1, h2 = fcnet_hiddens
    # Fused-gate LSTM weights, gate order (i, f, g, o), pre-transposed so every
    # kernel matmul is a row-major (B, in) @ (in, out).
    wih = w(ks[0], (obs_dim, 4 * H))
    whh = w(ks[1], (H, 4 * H))
    b = w(ks[2], (1, 4 * H), 0.01)                   # combined b_ih + b_hh
    pw1, pb1 = w(ks[3], (H, h1), 0.01), jnp.zeros((1, h1), jnp.float32)
    pw2, pb2 = w(ks[4], (h1, h2), 0.01), jnp.zeros((1, h2), jnp.float32)
    pwo, pbo = w(ks[5], (h2, num_outputs), 0.01), jnp.zeros((1, num_outputs), jnp.float32)
    qw1, qb1 = w(ks[6], (H, h1), 0.01), jnp.zeros((1, h1), jnp.float32)
    qw2, qb2 = w(ks[7], (h1, h2), 0.01), jnp.zeros((1, h2), jnp.float32)
    qwo, qbo = w(ks[8], (h2, 1), 0.01), jnp.zeros((1, 1), jnp.float32)
    return (wih, whh, b, pw1, pb1, pw2, pb2, pwo, pbo,
            qw1, qb1, qw2, qb2, qwo, qbo)


# ----------------------------- Pure-JAX reference --------------------------- #
def ref_forward(obs, params, *, max_seq_len):
    (wih, whh, b, pw1, pb1, pw2, pb2, pwo, pbo,
     qw1, qb1, qw2, qb2, qwo, qbo) = params
    B, _ = obs.shape
    H = whh.shape[0]
    h = jnp.zeros((B, H), jnp.float32)
    c = jnp.zeros((B, H), jnp.float32)
    for t in range(max_seq_len):
        x = obs if t == 0 else jnp.zeros_like(obs)   # zero padding after t = 0
        z = x @ wih + h @ whh + b
        i = jax.nn.sigmoid(z[:, 0:H])
        f = jax.nn.sigmoid(z[:, H:2 * H])
        g = jnp.tanh(z[:, 2 * H:3 * H])
        o = jax.nn.sigmoid(z[:, 3 * H:4 * H])
        c = f * c + i * g
        h = o * jnp.tanh(c)
    ph = jnp.maximum(h @ pw1 + pb1, 0.0)
    ph = jnp.maximum(ph @ pw2 + pb2, 0.0)
    pol = ph @ pwo + pbo
    qh = jnp.maximum(h @ qw1 + qb1, 0.0)
    qh = jnp.maximum(qh @ qw2 + qb2, 0.0)
    q = (qh @ qwo + qbo).reshape(-1)
    return pol, q, h, c


# ----------------------------------- main ----------------------------------- #
if __name__ == "__main__":
    # Small synthetic shapes consistent with the module's forward():
    B = 2            # batch
    OBS_DIM = 16     # obs_space.shape[0]
    H = 32           # lstm_cell_size -> 4H = 128 lane-dense fused gates
    HIDDENS = [32, 32]
    NUM_OUTPUTS = 4
    MAX_SEQ_LEN = 8  # TODO(synk): original module hardcodes max_seq_len=200; kept small here.

    key = jax.random.PRNGKey(0)
    k_obs, k_par = jax.random.split(key)
    obs = jax.random.normal(k_obs, (B, OBS_DIM), dtype=jnp.float32)
    params = init_params(k_par, OBS_DIM, H, HIDDENS, NUM_OUTPUTS)

    fwd = jax.jit(functools.partial(sac_lstm_forward, max_seq_len=MAX_SEQ_LEN))
    policy, q_val, new_state = fwd(obs, params)
    jax.block_until_ready((policy, q_val, new_state))

    # Check against a pure-JAX f32 reference (kernel uses bf16 matmul inputs,
    # f32 accumulation/carries -> small, bounded drift).
    ref_pol, ref_q, ref_h, ref_c = ref_forward(obs, params, max_seq_len=MAX_SEQ_LEN)
    assert policy.shape == (B, NUM_OUTPUTS) and q_val.shape == (B,)
    assert new_state[0].shape == (1, B, H) and new_state[1].shape == (1, B, H)
    assert jnp.allclose(policy, ref_pol, atol=1e-2, rtol=1e-2)
    assert jnp.allclose(q_val, ref_q, atol=1e-2, rtol=1e-2)
    assert jnp.allclose(new_state[0][0], ref_h, atol=1e-2, rtol=1e-2)
    assert jnp.allclose(new_state[1][0], ref_c, atol=1e-2, rtol=1e-2)

    print("KERNEL_OK")
</pallas_src>

<mosaic_0001>
module attributes {stable_mosaic.version = 11 : i64} {
  func.func @sac_lstm_kernel(%arg0: i32, %arg1: memref<8x16xf32, #tpu.memory_space<vmem>>, %arg2: memref<16x128xbf16, #tpu.memory_space<vmem>>, %arg3: memref<32x128xbf16, #tpu.memory_space<vmem>>, %arg4: memref<1x128xf32, #tpu.memory_space<vmem>>, %arg5: memref<32x64xbf16, #tpu.memory_space<vmem>>, %arg6: memref<1x64xf32, #tpu.memory_space<vmem>>, %arg7: memref<64x64xbf16, #tpu.memory_space<vmem>>, %arg8: memref<1x64xf32, #tpu.memory_space<vmem>>, %arg9: memref<64x128xbf16, #tpu.memory_space<vmem>>, %arg10: memref<1x128xf32, #tpu.memory_space<vmem>>, %arg11: memref<64x128xf32, #tpu.memory_space<vmem>>, %arg12: memref<8x128xf32, #tpu.memory_space<vmem>>) attributes {dimension_semantics = [#tpu.dimension_semantics<parallel>], iteration_bounds = array<i64: 1>, scalar_prefetch = 0 : i64, scratch_operands = 0 : i64, tpu.core_type = #tpu.core_type<tc>, window_params = [{transform_indices = @transform_0, window_bounds = array<i64: 8, 16>}, {pipeline_mode = #tpu.pipeline_mode<synchronous>, transform_indices = @transform_1, window_bounds = array<i64: 16, 128>}, {pipeline_mode = #tpu.pipeline_mode<synchronous>, transform_indices = @transform_2, window_bounds = array<i64: 32, 128>}, {pipeline_mode = #tpu.pipeline_mode<synchronous>, transform_indices = @transform_3, window_bounds = array<i64: 1, 128>}, {pipeline_mode = #tpu.pipeline_mode<synchronous>, transform_indices = @transform_4, window_bounds = array<i64: 32, 64>}, {pipeline_mode = #tpu.pipeline_mode<synchronous>, transform_indices = @transform_5, window_bounds = array<i64: 1, 64>}, {pipeline_mode = #tpu.pipeline_mode<synchronous>, transform_indices = @transform_6, window_bounds = array<i64: 64, 64>}, {pipeline_mode = #tpu.pipeline_mode<synchronous>, transform_indices = @transform_7, window_bounds = array<i64: 1, 64>}, {pipeline_mode = #tpu.pipeline_mode<synchronous>, transform_indices = @transform_8, window_bounds = array<i64: 64, 128>}, {pipeline_mode = #tpu.pipeline_mode<synchronous>, transform_indices = @transform_9, window_bounds = array<i64: 1, 128>}, {pipeline_mode = #tpu.pipeline_mode<synchronous>, transform_indices = @transform_10, window_bounds = array<i64: 64, 128>}, {transform_indices = @transform_11, window_bounds = array<i64: 8, 128>}]} {
    %c0 = arith.constant 0 : index
    %c0_0 = arith.constant 0 : index
    %0 = vector.load %arg3[%c0, %c0_0] : memref<32x128xbf16, #tpu.memory_space<vmem>>, vector<32x128xbf16>
    %c0_1 = arith.constant 0 : index
    %c0_2 = arith.constant 0 : index
    %1 = vector.load %arg4[%c0_1, %c0_2] : memref<1x128xf32, #tpu.memory_space<vmem>>, vector<1x128xf32>
    %2 = vector.shape_cast %1 : vector<1x128xf32> to vector<1x128xf32>
    %3 = vector.broadcast %2 : vector<1x128xf32> to vector<8x128xf32>
    %c0_3 = arith.constant 0 : index
    %c0_4 = arith.constant 0 : index
    %4 = vector.load %arg1[%c0_3, %c0_4] : memref<8x16xf32, #tpu.memory_space<vmem>>, vector<8x16xf32>
    %5 = arith.truncf %4 : vector<8x16xf32> to vector<8x16xbf16>
    %c0_5 = arith.constant 0 : index
    %c0_6 = arith.constant 0 : index
    %6 = vector.load %arg2[%c0_5, %c0_6] : memref<16x128xbf16, #tpu.memory_space<vmem>>, vector<16x128xbf16>
    %cst = arith.constant dense<0.000000e+00> : vector<8x128xf32>
    %7 = tpu.matmul %5, %6, %cst {dimension_numbers = #tpu.dot_dimension_numbers<[1], [0], [0], [1], [0, 0, 1, 1], [], []>} : vector<8x16xbf16>, vector<16x128xbf16>, vector<8x128xf32> -> vector<8x128xf32>
    %8 = arith.addf %7, %3 : vector<8x128xf32>
    %9 = math.tanh %8 : vector<8x128xf32>
    %10 = vector.extract_strided_slice %9 {offsets = [0, 0], sizes = [8, 32], strides = [1, 1]} : vector<8x128xf32> to vector<8x32xf32>
    %cst_7 = arith.constant 1.000000e+00 : f32
    %11 = vector.broadcast %cst_7 : f32 to vector<8x32xf32>
    %12 = arith.addf %10, %11 : vector<8x32xf32>
    %cst_8 = arith.constant 5.000000e-01 : f32
    %13 = vector.broadcast %cst_8 : f32 to vector<8x32xf32>
    %14 = arith.mulf %13, %12 : vector<8x32xf32>
    %15 = vector.extract_strided_slice %9 {offsets = [0, 64], sizes = [8, 32], strides = [1, 1]} : vector<8x128xf32> to vector<8x32xf32>
    %16 = arith.mulf %14, %15 : vector<8x32xf32>
    %17 = vector.extract_strided_slice %9 {offsets = [0, 96], sizes = [8, 32], strides = [1, 1]} : vector<8x128xf32> to vector<8x32xf32>
    %cst_9 = arith.constant 1.000000e+00 : f32
    %18 = vector.broadcast %cst_9 : f32 to vector<8x32xf32>
    %19 = arith.addf %17, %18 : vector<8x32xf32>
    %cst_10 = arith.constant 5.000000e-01 : f32
    %20 = vector.broadcast %cst_10 : f32 to vector<8x32xf32>
    %21 = arith.mulf %20, %19 : vector<8x32xf32>
    %22 = math.tanh %16 : vector<8x32xf32>
    %23 = arith.mulf %21, %22 : vector<8x32xf32>
    %c0_i32 = arith.constant 0 : i32
    %24 = arith.truncf %23 : vector<8x32xf32> to vector<8x32xbf16>
    %cst_11 = arith.constant dense<0.000000e+00> : vector<8x128xf32>
    %25 = tpu.matmul %24, %0, %cst_11 {dimension_numbers = #tpu.dot_dimension_numbers<[1], [0], [0], [1], [0, 0, 1, 1], [], []>} : vector<8x32xbf16>, vector<32x128xbf16>, vector<8x128xf32> -> vector<8x128xf32>
    %26 = arith.addf %25, %3 : vector<8x128xf32>
    %27 = math.tanh %26 : vector<8x128xf32>
    %28 = vector.extract_strided_slice %27 {offsets = [0, 0], sizes = [8, 32], strides = [1, 1]} : vector<8x128xf32> to vector<8x32xf32>
    %cst_12 = arith.constant 1.000000e+00 : f32
    %29 = vector.broadcast %cst_12 : f32 to vector<8x32xf32>
    %30 = arith.addf %28, %29 : vector<8x32xf32>
    %cst_13 = arith.constant 5.000000e-01 : f32
    %31 = vector.broadcast %cst_13 : f32 to vector<8x32xf32>
    %32 = arith.mulf %31, %30 : vector<8x32xf32>
    %33 = vector.extract_strided_slice %27 {offsets = [0, 32], sizes = [8, 32], strides = [1, 1]} : vector<8x128xf32> to vector<8x32xf32>
    %cst_14 = arith.constant 1.000000e+00 : f32
    %34 = vector.broadcast %cst_14 : f32 to vector<8x32xf32>
    %35 = arith.addf %33, %34 : vector<8x32xf32>
    %cst_15 = arith.constant 5.000000e-01 : f32
    %36 = vector.broadcast %cst_15 : f32 to vector<8x32xf32>
    %37 = arith.mulf %36, %35 : vector<8x32xf32>
    %38 = vector.extract_strided_slice %27 {offsets = [0, 64], sizes = [8, 32], strides = [1, 1]} : vector<8x128xf32> to vector<8x32xf32>
    %39 = vector.extract_strided_slice %27 {offsets = [0, 96], sizes = [8, 32], strides = [1, 1]} : vector<8x128xf32> to vector<8x32xf32>
    %cst_16 = arith.constant 1.000000e+00 : f32
    %40 = vector.broadcast %cst_16 : f32 to vector<8x32xf32>
    %41 = arith.addf %39, %40 : vector<8x32xf32>
    %cst_17 = arith.constant 5.000000e-01 : f32
    %42 = vector.broadcast %cst_17 : f32 to vector<8x32xf32>
    %43 = arith.mulf %42, %41 : vector<8x32xf32>
    %44 = arith.mulf %37, %16 : vector<8x32xf32>
    %45 = arith.mulf %32, %38 : vector<8x32xf32>
    %46 = arith.addf %44, %45 : vector<8x32xf32>
    %47 = math.tanh %46 : vector<8x32xf32>
    %48 = arith.mulf %43, %47 : vector<8x32xf32>
    %c1_i32 = arith.constant 1 : i32
    %49 = arith.truncf %48 : vector<8x32xf32> to vector<8x32xbf16>
    %cst_18 = arith.constant dense<0.000000e+00> : vector<8x128xf32>
    %50 = tpu.matmul %49, %0, %cst_18 {dimension_numbers = #tpu.dot_dimension_numbers<[1], [0], [0], [1], [0, 0, 1, 1], [], []>} : vector<8x32xbf16>, vector<32x128xbf16>, vector<8x128xf32> -> vector<8x128xf32>
    %51 = arith.addf %50, %3 : vector<8x128xf32>
    %52 = math.tanh %51 : vector<8x128xf32>
    %53 = vector.extract_strided_slice %52 {offsets = [0, 0], sizes = [8, 32], strides = [1, 1]} : vector<8x128xf32> to vector<8x32xf32>
    %cst_19 = arith.constant 1.000000e+00 : f32
    %54 = vector.broadcast %cst_19 : f32 to vector<8x32xf32>
    %55 = arith.addf %53, %54 : vector<8x32xf32>
    %cst_20 = arith.constant 5.000000e-01 : f32
    %56 = vector.broadcast %cst_20 : f32 to vector<8x32xf32>
    %57 = arith.mulf %56, %55 : vector<8x32xf32>
    %58 = vector.extract_strided_slice %52 {offsets = [0, 32], sizes = [8, 32], strides = [1, 1]} : vector<8x128xf32> to vector<8x32xf32>
    %cst_21 = arith.constant 1.000000e+00 : f32
    %59 = vector.broadcast %cst_21 : f32 to vector<8x32xf32>
    %60 = arith.addf %58, %59 : vector<8x32xf32>
    %cst_22 = arith.constant 5.000000e-01 : f32
    %61 = vector.broadcast %cst_22 : f32 to vector<8x32xf32>
    %62 = arith.mulf %61, %60 : vector<8x32xf32>
    %63 = vector.extract_strided_slice %52 {offsets = [0, 64], sizes = [8, 32], strides = [1, 1]} : vector<8x128xf32> to vector<8x32xf32>
    %64 = vector.extract_strided_slice %52 {offsets = [0, 96], sizes = [8, 32], strides = [1, 1]} : vector<8x128xf32> to vector<8x32xf32>
    %cst_23 = arith.constant 1.000000e+00 : f32
    %65 = vector.broadcast %cst_23 : f32 to vector<8x32xf32>
    %66 = arith.addf %64, %65 : vector<8x32xf32>
    %cst_24 = arith.constant 5.000000e-01 : f32
    %67 = vector.broadcast %cst_24 : f32 to vector<8x32xf32>
    %68 = arith.mulf %67, %66 : vector<8x32xf32>
    %69 = arith.mulf %62, %46 : vector<8x32xf32>
    %70 = arith.mulf %57, %63 : vector<8x32xf32>
    %71 = arith.addf %69, %70 : vector<8x32xf32>
    %72 = math.tanh %71 : vector<8x32xf32>
    %73 = arith.mulf %68, %72 : vector<8x32xf32>
    %c2_i32 = arith.constant 2 : i32
    %74 = arith.truncf %73 : vector<8x32xf32> to vector<8x32xbf16>
    %cst_25 = arith.constant dense<0.000000e+00> : vector<8x128xf32>
    %75 = tpu.matmul %74, %0, %cst_25 {dimension_numbers = #tpu.dot_dimension_numbers<[1], [0], [0], [1], [0, 0, 1, 1], [], []>} : vector<8x32xbf16>, vector<32x128xbf16>, vector<8x128xf32> -> vector<8x128xf32>
    %76 = arith.addf %75, %3 : vector<8x128xf32>
    %77 = math.tanh %76 : vector<8x128xf32>
    %78 = vector.extract_strided_slice %77 {offsets = [0, 0], sizes = [8, 32], strides = [1, 1]} : vector<8x128xf32> to vector<8x32xf32>
    %cst_26 = arith.constant 1.000000e+00 : f32
    %79 = vector.broadcast %cst_26 : f32 to vector<8x32xf32>
    %80 = arith.addf %78, %79 : vector<8x32xf32>
    %cst_27 = arith.constant 5.000000e-01 : f32
    %81 = vector.broadcast %cst_27 : f32 to vector<8x32xf32>
    %82 = arith.mulf %81, %80 : vector<8x32xf32>
    %83 = vector.extract_strided_slice %77 {offsets = [0, 32], sizes = [8, 32], strides = [1, 1]} : vector<8x128xf32> to vector<8x32xf32>
    %cst_28 = arith.constant 1.000000e+00 : f32
    %84 = vector.broadcast %cst_28 : f32 to vector<8x32xf32>
    %85 = arith.addf %83, %84 : vector<8x32xf32>
    %cst_29 = arith.constant 5.000000e-01 : f32
    %86 = vector.broadcast %cst_29 : f32 to vector<8x32xf32>
    %87 = arith.mulf %86, %85 : vector<8x32xf32>
    %88 = vector.extract_strided_slice %77 {offsets = [0, 64], sizes = [8, 32], strides = [1, 1]} : vector<8x128xf32> to vector<8x32xf32>
    %89 = vector.extract_strided_slice %77 {offsets = [0, 96], sizes = [8, 32], strides = [1, 1]} : vector<8x128xf32> to vector<8x32xf32>
    %cst_30 = arith.constant 1.000000e+00 : f32
    %90 = vector.broadcast %cst_30 : f32 to vector<8x32xf32>
    %91 = arith.addf %89, %90 : vector<8x32xf32>
    %cst_31 = arith.constant 5.000000e-01 : f32
    %92 = vector.broadcast %cst_31 : f32 to vector<8x32xf32>
    %93 = arith.mulf %92, %91 : vector<8x32xf32>
    %94 = arith.mulf %87, %71 : vector<8x32xf32>
    %95 = arith.mulf %82, %88 : vector<8x32xf32>
    %96 = arith.addf %94, %95 : vector<8x32xf32>
    %97 = math.tanh %96 : vector<8x32xf32>
    %98 = arith.mulf %93, %97 : vector<8x32xf32>
    %c3_i32 = arith.constant 3 : i32
    %99 = arith.truncf %98 : vector<8x32xf32> to vector<8x32xbf16>
    %cst_32 = arith.constant dense<0.000000e+00> : vector<8x128xf32>
    %100 = tpu.matmul %99, %0, %cst_32 {dimension_numbers = #tpu.dot_dimension_numbers<[1], [0], [0], [1], [0, 0, 1, 1], [], []>} : vector<8x32xbf16>, vector<32x128xbf16>, vector<8x128xf32> -> vector<8x128xf32>
    %101 = arith.addf %100, %3 : vector<8x128xf32>
    %102 = math.tanh %101 : vector<8x128xf32>
    %103 = vector.extract_strided_slice %102 {offsets = [0, 0], sizes = [8, 32], strides = [1, 1]} : vector<8x128xf32> to vector<8x32xf32>
    %cst_33 = arith.constant 1.000000e+00 : f32
    %104 = vector.broadcast %cst_33 : f32 to vector<8x32xf32>
    %105 = arith.addf %103, %104 : vector<8x32xf32>
    %cst_34 = arith.constant 5.000000e-01 : f32
    %106 = vector.broadcast %cst_34 : f32 to vector<8x32xf32>
    %107 = arith.mulf %106, %105 : vector<8x32xf32>
    %108 = vector.extract_strided_slice %102 {offsets = [0, 32], sizes = [8, 32], strides = [1, 1]} : vector<8x128xf32> to vector<8x32xf32>
    %cst_35 = arith.constant 1.000000e+00 : f32
    %109 = vector.broadcast %cst_35 : f32 to vector<8x32xf32>
    %110 = arith.addf %108, %109 : vector<8x32xf32>
    %cst_36 = arith.constant 5.000000e-01 : f32
    %111 = vector.broadcast %cst_36 : f32 to vector<8x32xf32>
    %112 = arith.mulf %111, %110 : vector<8x32xf32>
    %113 = vector.extract_strided_slice %102 {offsets = [0, 64], sizes = [8, 32], strides = [1, 1]} : vector<8x128xf32> to vector<8x32xf32>
    %114 = vector.extract_strided_slice %102 {offsets = [0, 96], sizes = [8, 32], strides = [1, 1]} : vector<8x128xf32> to vector<8x32xf32>
    %cst_37 = arith.constant 1.000000e+00 : f32
    %115 = vector.broadcast %cst_37 : f32 to vector<8x32xf32>
    %116 = arith.addf %114, %115 : vector<8x32xf32>
    %cst_38 = arith.constant 5.000000e-01 : f32
    %117 = vector.broadcast %cst_38 : f32 to vector<8x32xf32>
    %118 = arith.mulf %117, %116 : vector<8x32xf32>
    %119 = arith.mulf %112, %96 : vector<8x32xf32>
    %120 = arith.mulf %107, %113 : vector<8x32xf32>
    %121 = arith.addf %119, %120 : vector<8x32xf32>
    %122 = math.tanh %121 : vector<8x32xf32>
    %123 = arith.mulf %118, %122 : vector<8x32xf32>
    %c4_i32 = arith.constant 4 : i32
    %124 = arith.truncf %123 : vector<8x32xf32> to vector<8x32xbf16>
    %cst_39 = arith.constant dense<0.000000e+00> : vector<8x128xf32>
    %125 = tpu.matmul %124, %0, %cst_39 {dimension_numbers = #tpu.dot_dimension_numbers<[1], [0], [0], [1], [0, 0, 1, 1], [], []>} : vector<8x32xbf16>, vector<32x128xbf16>, vector<8x128xf32> -> vector<8x128xf32>
    %126 = arith.addf %125, %3 : vector<8x128xf32>
    %127 = math.tanh %126 : vector<8x128xf32>
    %128 = vector.extract_strided_slice %127 {offsets = [0, 0], sizes = [8, 32], strides = [1, 1]} : vector<8x128xf32> to vector<8x32xf32>
    %cst_40 = arith.constant 1.000000e+00 : f32
    %129 = vector.broadcast %cst_40 : f32 to vector<8x32xf32>
    %130 = arith.addf %128, %129 : vector<8x32xf32>
    %cst_41 = arith.constant 5.000000e-01 : f32
    %131 = vector.broadcast %cst_41 : f32 to vector<8x32xf32>
    %132 = arith.mulf %131, %130 : vector<8x32xf32>
    %133 = vector.extract_strided_slice %127 {offsets = [0, 32], sizes = [8, 32], strides = [1, 1]} : vector<8x128xf32> to vector<8x32xf32>
    %cst_42 = arith.constant 1.000000e+00 : f32
    %134 = vector.broadcast %cst_42 : f32 to vector<8x32xf32>
    %135 = arith.addf %133, %134 : vector<8x32xf32>
    %cst_43 = arith.constant 5.000000e-01 : f32
    %136 = vector.broadcast %cst_43 : f32 to vector<8x32xf32>
    %137 = arith.mulf %136, %135 : vector<8x32xf32>
    %138 = vector.extract_strided_slice %127 {offsets = [0, 64], sizes = [8, 32], strides = [1, 1]} : vector<8x128xf32> to vector<8x32xf32>
    %139 = vector.extract_strided_slice %127 {offsets = [0, 96], sizes = [8, 32], strides = [1, 1]} : vector<8x128xf32> to vector<8x32xf32>
    %cst_44 = arith.constant 1.000000e+00 : f32
    %140 = vector.broadcast %cst_44 : f32 to vector<8x32xf32>
    %141 = arith.addf %139, %140 : vector<8x32xf32>
    %cst_45 = arith.constant 5.000000e-01 : f32
    %142 = vector.broadcast %cst_45 : f32 to vector<8x32xf32>
    %143 = arith.mulf %142, %141 : vector<8x32xf32>
    %144 = arith.mulf %137, %121 : vector<8x32xf32>
    %145 = arith.mulf %132, %138 : vector<8x32xf32>
    %146 = arith.addf %144, %145 : vector<8x32xf32>
    %147 = math.tanh %146 : vector<8x32xf32>
    %148 = arith.mulf %143, %147 : vector<8x32xf32>
    %c5_i32 = arith.constant 5 : i32
    %149 = arith.truncf %148 : vector<8x32xf32> to vector<8x32xbf16>
    %cst_46 = arith.constant dense<0.000000e+00> : vector<8x128xf32>
    %150 = tpu.matmul %149, %0, %cst_46 {dimension_numbers = #tpu.dot_dimension_numbers<[1], [0], [0], [1], [0, 0, 1, 1], [], []>} : vector<8x32xbf16>, vector<32x128xbf16>, vector<8x128xf32> -> vector<8x128xf32>
    %151 = arith.addf %150, %3 : vector<8x128xf32>
    %152 = math.tanh %151 : vector<8x128xf32>
    %153 = vector.extract_strided_slice %152 {offsets = [0, 0], sizes = [8, 32], strides = [1, 1]} : vector<8x128xf32> to vector<8x32xf32>
    %cst_47 = arith.constant 1.000000e+00 : f32
    %154 = vector.broadcast %cst_47 : f32 to vector<8x32xf32>
    %155 = arith.addf %153, %154 : vector<8x32xf32>
    %cst_48 = arith.constant 5.000000e-01 : f32
    %156 = vector.broadcast %cst_48 : f32 to vector<8x32xf32>
    %157 = arith.mulf %156, %155 : vector<8x32xf32>
    %158 = vector.extract_strided_slice %152 {offsets = [0, 32], sizes = [8, 32], strides = [1, 1]} : vector<8x128xf32> to vector<8x32xf32>
    %cst_49 = arith.constant 1.000000e+00 : f32
    %159 = vector.broadcast %cst_49 : f32 to vector<8x32xf32>
    %160 = arith.addf %158, %159 : vector<8x32xf32>
    %cst_50 = arith.constant 5.000000e-01 : f32
    %161 = vector.broadcast %cst_50 : f32 to vector<8x32xf32>
    %162 = arith.mulf %161, %160 : vector<8x32xf32>
    %163 = vector.extract_strided_slice %152 {offsets = [0, 64], sizes = [8, 32], strides = [1, 1]} : vector<8x128xf32> to vector<8x32xf32>
    %164 = vector.extract_strided_slice %152 {offsets = [0, 96], sizes = [8, 32], strides = [1, 1]} : vector<8x128xf32> to vector<8x32xf32>
    %cst_51 = arith.constant 1.000000e+00 : f32
    %165 = vector.broadcast %cst_51 : f32 to vector<8x32xf32>
    %166 = arith.addf %164, %165 : vector<8x32xf32>
    %cst_52 = arith.constant 5.000000e-01 : f32
    %167 = vector.broadcast %cst_52 : f32 to vector<8x32xf32>
    %168 = arith.mulf %167, %166 : vector<8x32xf32>
    %169 = arith.mulf %162, %146 : vector<8x32xf32>
    %170 = arith.mulf %157, %163 : vector<8x32xf32>
    %171 = arith.addf %169, %170 : vector<8x32xf32>
    %172 = math.tanh %171 : vector<8x32xf32>
    %173 = arith.mulf %168, %172 : vector<8x32xf32>
    %c6_i32 = arith.constant 6 : i32
    %174 = arith.truncf %173 : vector<8x32xf32> to vector<8x32xbf16>
    %cst_53 = arith.constant dense<0.000000e+00> : vector<8x128xf32>
    %175 = tpu.matmul %174, %0, %cst_53 {dimension_numbers = #tpu.dot_dimension_numbers<[1], [0], [0], [1], [0, 0, 1, 1], [], []>} : vector<8x32xbf16>, vector<32x128xbf16>, vector<8x128xf32> -> vector<8x128xf32>
    %176 = arith.addf %175, %3 : vector<8x128xf32>
    %177 = math.tanh %176 : vector<8x128xf32>
    %178 = vector.extract_strided_slice %177 {offsets = [0, 0], sizes = [8, 32], strides = [1, 1]} : vector<8x128xf32> to vector<8x32xf32>
    %cst_54 = arith.constant 1.000000e+00 : f32
    %179 = vector.broadcast %cst_54 : f32 to vector<8x32xf32>
    %180 = arith.addf %178, %179 : vector<8x32xf32>
    %cst_55 = arith.constant 5.000000e-01 : f32
    %181 = vector.broadcast %cst_55 : f32 to vector<8x32xf32>
    %182 = arith.mulf %181, %180 : vector<8x32xf32>
    %183 = vector.extract_strided_slice %177 {offsets = [0, 32], sizes = [8, 32], strides = [1, 1]} : vector<8x128xf32> to vector<8x32xf32>
    %cst_56 = arith.constant 1.000000e+00 : f32
    %184 = vector.broadcast %cst_56 : f32 to vector<8x32xf32>
    %185 = arith.addf %183, %184 : vector<8x32xf32>
    %cst_57 = arith.constant 5.000000e-01 : f32
    %186 = vector.broadcast %cst_57 : f32 to vector<8x32xf32>
    %187 = arith.mulf %186, %185 : vector<8x32xf32>
    %188 = vector.extract_strided_slice %177 {offsets = [0, 64], sizes = [8, 32], strides = [1, 1]} : vector<8x128xf32> to vector<8x32xf32>
    %189 = vector.extract_strided_slice %177 {offsets = [0, 96], sizes = [8, 32], strides = [1, 1]} : vector<8x128xf32> to vector<8x32xf32>
    %cst_58 = arith.constant 1.000000e+00 : f32
    %190 = vector.broadcast %cst_58 : f32 to vector<8x32xf32>
    %191 = arith.addf %189, %190 : vector<8x32xf32>
    %cst_59 = arith.constant 5.000000e-01 : f32
    %192 = vector.broadcast %cst_59 : f32 to vector<8x32xf32>
    %193 = arith.mulf %192, %191 : vector<8x32xf32>
    %194 = arith.mulf %187, %171 : vector<8x32xf32>
    %195 = arith.mulf %182, %188 : vector<8x32xf32>
    %196 = arith.addf %194, %195 : vector<8x32xf32>
    %197 = math.tanh %196 : vector<8x32xf32>
    %198 = arith.mulf %193, %197 : vector<8x32xf32>
    %199 = arith.truncf %198 : vector<8x32xf32> to vector<8x32xbf16>
    %c0_60 = arith.constant 0 : index
    %c0_61 = arith.constant 0 : index
    %200 = vector.load %arg5[%c0_60, %c0_61] : memref<32x64xbf16, #tpu.memory_space<vmem>>, vector<32x64xbf16>
    %cst_62 = arith.constant dense<0.000000e+00> : vector<8x64xf32>
    %201 = tpu.matmul %199, %200, %cst_62 {dimension_numbers = #tpu.dot_dimension_numbers<[1], [0], [0], [1], [0, 0, 1, 1], [], []>} : vector<8x32xbf16>, vector<32x64xbf16>, vector<8x64xf32> -> vector<8x64xf32>
    %c0_63 = arith.constant 0 : index
    %c0_64 = arith.constant 0 : index
    %202 = vector.load %arg6[%c0_63, %c0_64] : memref<1x64xf32, #tpu.memory_space<vmem>>, vector<1x64xf32>
    %203 = vector.broadcast %202 : vector<1x64xf32> to vector<8x64xf32>
    %204 = arith.addf %201, %203 : vector<8x64xf32>
    %cst_65 = arith.constant 0.000000e+00 : f32
    %205 = vector.broadcast %cst_65 : f32 to vector<8x64xf32>
    %206 = arith.maximumf %204, %205 : vector<8x64xf32>
    %207 = arith.truncf %206 : vector<8x64xf32> to vector<8x64xbf16>
    %c0_66 = arith.constant 0 : index
    %c0_67 = arith.constant 0 : index
    %208 = vector.load %arg7[%c0_66, %c0_67] : memref<64x64xbf16, #tpu.memory_space<vmem>>, vector<64x64xbf16>
    %cst_68 = arith.constant dense<0.000000e+00> : vector<8x64xf32>
    %209 = tpu.matmul %207, %208, %cst_68 {dimension_numbers = #tpu.dot_dimension_numbers<[1], [0], [0], [1], [0, 0, 1, 1], [], []>} : vector<8x64xbf16>, vector<64x64xbf16>, vector<8x64xf32> -> vector<8x64xf32>
    %c0_69 = arith.constant 0 : index
    %c0_70 = arith.constant 0 : index
    %210 = vector.load %arg8[%c0_69, %c0_70] : memref<1x64xf32, #tpu.memory_space<vmem>>, vector<1x64xf32>
    %211 = vector.broadcast %210 : vector<1x64xf32> to vector<8x64xf32>
    %212 = arith.addf %209, %211 : vector<8x64xf32>
    %cst_71 = arith.constant 0.000000e+00 : f32
    %213 = vector.broadcast %cst_71 : f32 to vector<8x64xf32>
    %214 = arith.maximumf %212, %213 : vector<8x64xf32>
    %215 = arith.truncf %214 : vector<8x64xf32> to vector<8x64xbf16>
    %c0_72 = arith.constant 0 : index
    %c0_73 = arith.constant 0 : index
    %216 = vector.load %arg9[%c0_72, %c0_73] : memref<64x128xbf16, #tpu.memory_space<vmem>>, vector<64x128xbf16>
    %cst_74 = arith.constant dense<0.000000e+00> : vector<8x128xf32>
    %217 = tpu.matmul %215, %216, %cst_74 {dimension_numbers = #tpu.dot_dimension_numbers<[1], [0], [0], [1], [0, 0, 1, 1], [], []>} : vector<8x64xbf16>, vector<64x128xbf16>, vector<8x128xf32> -> vector<8x128xf32>
    %c0_75 = arith.constant 0 : index
    %c0_76 = arith.constant 0 : index
    %218 = vector.load %arg10[%c0_75, %c0_76] : memref<1x128xf32, #tpu.memory_space<vmem>>, vector<1x128xf32>
    %219 = vector.broadcast %218 : vector<1x128xf32> to vector<8x128xf32>
    %220 = arith.addf %217, %219 : vector<8x128xf32>
    %221 = tpu.concatenate %198, %196 in 1 : vector<8x32xf32>, vector<8x32xf32> -> vector<8x64xf32>
    %c0_77 = arith.constant 0 : index
    %c0_78 = arith.constant 0 : index
    %222 = vector.load %arg11[%c0_77, %c0_78] : memref<64x128xf32, #tpu.memory_space<vmem>>, vector<64x128xf32>
    %cst_79 = arith.constant dense<0.000000e+00> : vector<8x128xf32>
    %223 = tpu.matmul %221, %222, %cst_79 {dimension_numbers = #tpu.dot_dimension_numbers<[1], [0], [0], [1], [0, 0, 1, 1], [], []>} : vector<8x64xf32>, vector<64x128xf32>, vector<8x128xf32> -> vector<8x128xf32>
    %224 = arith.addf %220, %223 : vector<8x128xf32>
    %c0_80 = arith.constant 0 : index
    %c0_81 = arith.constant 0 : index
    %225 = vector.load %arg12[%c0_80, %c0_81] : memref<8x128xf32, #tpu.memory_space<vmem>>, vector<8x128xf32>
    tpu.vector_store %arg12[%c0_80, %c0_81], %224 {strides = array<i32>} : memref<8x128xf32, #tpu.memory_space<vmem>>, vector<8x128xf32>,
    return
  }
  func.func @transform_0(%arg0: i32) -> (i32, i32) {
    %c0_i32 = arith.constant 0 : i32
    %c0_i32_0 = arith.constant 0 : i32
    return %arg0, %c0_i32 : i32, i32
  }
  func.func @transform_1(%arg0: i32) -> (i32, i32) {
    %c0_i32 = arith.constant 0 : i32
    %c0_i32_0 = arith.constant 0 : i32
    %c0_i32_1 = arith.constant 0 : i32
    return %c0_i32, %c0_i32_0 : i32, i32
  }
  func.func @transform_2(%arg0: i32) -> (i32, i32) {
    %c0_i32 = arith.constant 0 : i32
    %c0_i32_0 = arith.constant 0 : i32
    %c0_i32_1 = arith.constant 0 : i32
    return %c0_i32, %c0_i32_0 : i32, i32
  }
  func.func @transform_3(%arg0: i32) -> (i32, i32) {
    %c0_i32 = arith.constant 0 : i32
    %c0_i32_0 = arith.constant 0 : i32
    %c0_i32_1 = arith.constant 0 : i32
    return %c0_i32, %c0_i32_0 : i32, i32
  }
  func.func @transform_4(%arg0: i32) -> (i32, i32) {
    %c0_i32 = arith.constant 0 : i32
    %c0_i32_0 = arith.constant 0 : i32
    %c0_i32_1 = arith.constant 0 : i32
    return %c0_i32, %c0_i32_0 : i32, i32
  }
  func.func @transform_5(%arg0: i32) -> (i32, i32) {
    %c0_i32 = arith.constant 0 : i32
    %c0_i32_0 = arith.constant 0 : i32
    %c0_i32_1 = arith.constant 0 : i32
    return %c0_i32, %c0_i32_0 : i32, i32
  }
  func.func @transform_6(%arg0: i32) -> (i32, i32) {
    %c0_i32 = arith.constant 0 : i32
    %c0_i32_0 = arith.constant 0 : i32
    %c0_i32_1 = arith.constant 0 : i32
    return %c0_i32, %c0_i32_0 : i32, i32
  }
  func.func @transform_7(%arg0: i32) -> (i32, i32) {
    %c0_i32 = arith.constant 0 : i32
    %c0_i32_0 = arith.constant 0 : i32
    %c0_i32_1 = arith.constant 0 : i32
    return %c0_i32, %c0_i32_0 : i32, i32
  }
  func.func @transform_8(%arg0: i32) -> (i32, i32) {
    %c0_i32 = arith.constant 0 : i32
    %c0_i32_0 = arith.constant 0 : i32
    %c0_i32_1 = arith.constant 0 : i32
    return %c0_i32, %c0_i32_0 : i32, i32
  }
  func.func @transform_9(%arg0: i32) -> (i32, i32) {
    %c0_i32 = arith.constant 0 : i32
    %c0_i32_0 = arith.constant 0 : i32
    %c0_i32_1 = arith.constant 0 : i32
    return %c0_i32, %c0_i32_0 : i32, i32
  }
  func.func @transform_10(%arg0: i32) -> (i32, i32) {
    %c0_i32 = arith.constant 0 : i32
    %c0_i32_0 = arith.constant 0 : i32
    %c0_i32_1 = arith.constant 0 : i32
    return %c0_i32, %c0_i32_0 : i32, i32
  }
  func.func @transform_11(%arg0: i32) -> (i32, i32) {
    %c0_i32 = arith.constant 0 : i32
    %c0_i32_0 = arith.constant 0 : i32
    return %arg0, %c0_i32 : i32, i32
  }
}

</mosaic_0001>

<bundles_post_ra>
// kernel: mul.17
= control target key start
LH: loop header
LB: loop body
LE: loop exit
PB: predicated region body
PF: predicated region fallthrough
CT: control target
= control target key end

     0   :  { %s34_s0 = inlined_call_operand.vmem [shape: f32[1,128], index: 0, kind: input, shape index: {}]   ;;  %s35_s1 = inlined_call_operand.vmem [shape: f32[1,128], index: 1, kind: input, shape index: {}]   ;;  %s36_s2 = inlined_call_operand.vmem [shape: f32[1,128], index: 2, kind: output, shape index: {}]  }
   0x1   :  { %v3_v0 = vld [vmem:[%s34_s0] sm:$0x1] }
   0x2   :  { %v4_v1 = vld [vmem:[%s35_s1] sm:$0x1] }
   0x3   :  { %v7_v2 = vmul.f32 %v4_v1, %v3_v0 }
   0x5   :  { %9 = vst [vmem:[%s36_s2] sm:$0x1] %v7_v2 }

// kernel: sac_lstm_forward.1
= control target key start
LH: loop header
LB: loop body
LE: loop exit
PB: predicated region body
PF: predicated region fallthrough
CT: control target
= control target key end

     0   :  { %v1172_v0 = vmov 0.0   ;;  %vm1173_vm0 = vmmov 0   ;;  %vm60_vm1 = vcmask 130048   ;;  %s1175_s25 = smov 96   ;;  %s1176_s26 = smov 32   ;;  %vm134_vm2 = vcmask 261120   ;;  %s1451_s1 = inlined_call_operand.vmem [shape: bf16[16,128], index: 1, kind: input, shape index: {}]   ;;  %s1452_s0 = inlined_call_operand.vmem [shape: f32[8,16], index: 0, kind: input, shape index: {}]   ;;  %s1453_s3 = inlined_call_operand.vmem [shape: f32[1,128], index: 3, kind: input, shape index: {}]   ;;  %s1454_s2 = inlined_call_operand.vmem [shape: bf16[32,128], index: 2, kind: input, shape index: {}]   ;;  %s1455_s4 = inlined_call_operand.vmem [shape: bf16[32,64], index: 4, kind: input, shape index: {}]   ;;  %s1456_s6 = inlined_call_operand.vmem [shape: bf16[64,64], index: 6, kind: input, shape index: {}]   ;;  %s1457_s8 = inlined_call_operand.vmem [shape: bf16[64,128], index: 8, kind: input, shape index: {}]   ;;  %s1458_s5 = inlined_call_operand.vmem [shape: f32[1,64], index: 5, kind: input, shape index: {}]   ;;  %s1459_s10 = inlined_call_operand.vmem [shape: f32[64,128], index: 10, kind: input, shape index: {}]   ;;  %s1460_s7 = inlined_call_operand.vmem [shape: f32[1,64], index: 7, kind: input, shape index: {}]   ;;  %s1461_s9 = inlined_call_operand.vmem [shape: f32[1,128], index: 9, kind: input, shape index: {}]   ;;  %s1462_s11 = inlined_call_operand.vmem [shape: f32[8,128], index: 11, kind: output, shape index: {}]  }
   0x1   :  { %1009 = vmatprep.subr.bf16.mxu0 %v1172_v0  ;;  %v1127_v1 = vld [vmem:[%s1451_s1] sm:$0xff]   ;;  %1011 = vmatprep.mubr.msk.bf16.mxu0 %vm1173_vm0, %v1172_v0  ;;  %v1262_v15 = vld [vmem:[%s1454_s2 + $0x8] sm:$0xff]   ;;  %vm715_vm3 = vcmask 523264  }
   0x2   :  { %v50_v2 = vld [vmem:[%s1452_s0] sm:$0xff]  ;;  %1015 = vmatprep.subr.bf16.mxu1 %v1172_v0  ;;  %1019 = vmatprep.mubr.msk.bf16.mxu1 %vm1173_vm0, %v1172_v0  ;;  %s1174_s0 = smov 64  }
   0x3   :  { %1010 = vmatpush3.bf16.msra.mxu0 %v1127_v1  ;;  %v51_v3 = vpack.c.bf16 %v50_v2, %v50_v2  ;;  %v1255_v4 = vld [vmem:[%s1453_s3] ss:$0 sm:$0xff]  ;;  %1016 = vmatpush3.bf16.msra.mxu1 %v1262_v15 }
   0x4   :  { %1023 = vmatprep.subr.bf16.mxu0 %v1172_v0  ;;  %v1268_v16 = vld [vmem:[%s1454_s2] sm:$0xff]   ;;  %1017 = vmatprep.subr.bf16.mxu1 %v1172_v0 }
   0x6   :  { %1012 = vmatmul.mubr.msk.bf16.vlgmr.msra.gmra.mxu0 %vm60_vm1, %v51_v3 }
   0x7   :  { %1027 = vmatprep.mubr.msk.bf16.mxu0 %vm1173_vm0, %v1172_v0  ;;  %1024 = vmatpush3.bf16.msra.mxu0 %v1262_v15 }
   0x8   :  { %1025 = vmatprep.subr.bf16.mxu0 %v1172_v0  ;;  %1018 = vmatpush3.bf16.msra.mxu1 %v1268_v16 }
   0x9   :  { %1031 = vmatprep.subr.bf16.mxu1 %v1172_v0 }
   0xb   :  { %1026 = vmatpush3.bf16.msra.mxu0 %v1268_v16 }
   0xc   :  { %1039 = vmatprep.subr.bf16.mxu0 %v1172_v0 }
  0xc6   :  { %v98_v5 = vpop.f32.mrf.mxu0 }
  0xc7   :  { %v99_v6 = vadd.f32 %v1255_v4, %v98_v5 }
  0xc8   :  { %v1013_v7 = vpop.f32.mrf.mxu0 }
  0xc9   :  { %1140 = vtanh.f32 %v99_v6 }
  0xca   :  { %v101_v8 = vpop.f32.mrf.mxu0 }
  0xcc   :  { %v1014_v9 = vpop.f32.mrf.mxu0 }
  0xd6   :  { %v1141_v10 = vpop.eup %1140 }
  0xd7   :  { %108 = vrot.lane.b32.xlu0 %v1141_v10, %s1174_s0  ;;  %v105_v11 = vadd.f32 1.0, %v1141_v10 }
  0xd9   :  { %v106_v12 = vmul.f32 0.5, %v105_v11 }
 0x149   :  { %v109_v13 = vpop.permute.xlu0 %108 }
 0x14a   :  { %v111_v14 = vmul.f32 %v109_v13, %v106_v12 }
 0x14c   :  { %1142 = vtanh.f32 %v111_v14 }
 0x159   :  { %v1143_v17 = vpop.eup %1142 }
 0x15a   :  { %114 = vrot.lane.b32.xlu0 %v1143_v17, %s1175_s25 }
 0x15e   :  { %182 = vrot.lane.b32.xlu0 %v111_v14, %s1176_s26 }
 0x1cc   :  { %v115_v18 = vpop.permute.xlu0 %114 }
 0x1cd   :  { %v117_v19 = vmul.f32 %v115_v18, %v106_v12 }
 0x1cf   :  { %v118_v20 = vpack.c.bf16 %v117_v19, %v117_v19 }
 0x1d0   :  { %v183_v32 = vpop.permute.xlu0 %182 }
 0x1d1   :  { %120 = vrot.lane.b32.xlu1 %v118_v20, %s1176_s26 }
 0x243   :  { %v121_v21 = vpop.permute.xlu1 %120 }
 0x244   :  { %1020 = vmatmul.mubr.msk.bf16.vlgmr.msra.gmra.mxu1 %vm134_vm2, %v121_v21 }
 0x245   :  { %1032 = vmatpush3.bf16.msra.mxu1 %v1262_v15  ;;  %1035 = vmatprep.mubr.msk.bf16.mxu1 %vm1173_vm0, %v1172_v0 }
 0x246   :  { %1033 = vmatprep.subr.bf16.mxu1 %v1172_v0 }
 0x249   :  { %1034 = vmatpush3.bf16.msra.mxu1 %v1268_v16 }
 0x24a   :  { %1047 = vmatprep.subr.bf16.mxu1 %v1172_v0 }
 0x304   :  { %v172_v22 = vpop.f32.mrf.mxu1 }
 0x305   :  { %v173_v23 = vadd.f32 %v1255_v4, %v172_v22 }
 0x306   :  { %v1021_v24 = vpop.f32.mrf.mxu1 }
 0x307   :  { %1144 = vtanh.f32 %v173_v23 }
 0x308   :  { %v175_v25 = vpop.f32.mrf.mxu1 }
 0x30a   :  { %v1022_v26 = vpop.f32.mrf.mxu1 }
 0x314   :  { %v1145_v27 = vpop.eup %1144 }
 0x315   :  { %187 = vrot.lane.b32.xlu1 %v1145_v27, %s1174_s0  ;;  %v179_v28 = vadd.f32 1.0, %v1145_v27 }
 0x317   :  { %v180_v29 = vmul.f32 0.5, %v179_v28 }
 0x319   :  { %v185_v33 = vmul.f32 %v183_v32, %v180_v29 }
 0x387   :  { %v188_v30 = vpop.permute.xlu1 %187 }
 0x388   :  { %v190_v31 = vmul.f32 %v188_v30, %v180_v29 }
 0x38a   :  { %192 = vrot.lane.b32.xlu1 %v190_v31, %s1176_s26 }
 0x3fc   :  { %v193_v34 = vpop.permute.xlu1 %192 }
 0x3fd   :  { %v195_v35 = vadd.f32 %v193_v34, %v185_v33 }
 0x3ff   :  { %1146 = vtanh.f32 %v195_v35 }
 0x40c   :  { %v1147_v36 = vpop.eup %1146 }
 0x40d   :  { %198 = vrot.lane.b32.xlu0 %v1147_v36, %s1174_s0 }
 0x47f   :  { %v199_v37 = vpop.permute.xlu0 %198 }
 0x480   :  { %v201_v38 = vmul.f32 %v199_v37, %v180_v29 }
 0x482   :  { %v202_v39 = vpack.c.bf16 %v201_v38, %v201_v38 }
 0x484   :  { %204 = vrot.lane.b32.xlu1 %v202_v39, %s1176_s26 }
 0x4f6   :  { %v205_v40 = vpop.permute.xlu1 %204 }
 0x4f7   :  { %1028 = vmatmul.mubr.msk.bf16.vlgmr.msra.gmra.mxu0 %vm134_vm2, %v205_v40 }
 0x4f8   :  { %1040 = vmatpush3.bf16.msra.mxu0 %v1262_v15  ;;  %1043 = vmatprep.mubr.msk.bf16.mxu0 %vm1173_vm0, %v1172_v0 }
 0x4f9   :  { %1041 = vmatprep.subr.bf16.mxu0 %v1172_v0 }
 0x4fc   :  { %1042 = vmatpush3.bf16.msra.mxu0 %v1268_v16 }
 0x4fd   :  { %1055 = vmatprep.subr.bf16.mxu0 %v1172_v0 }
 0x5b7   :  { %v243_v41 = vpop.f32.mrf.mxu0 }
 0x5b8   :  { %v244_v42 = vadd.f32 %v1255_v4, %v243_v41 }
 0x5b9   :  { %v1029_v43 = vpop.f32.mrf.mxu0 }
 0x5ba   :  { %1148 = vtanh.f32 %v244_v42 }
 0x5bb   :  { %v246_v44 = vpop.f32.mrf.mxu0 }
 0x5bd   :  { %v1030_v45 = vpop.f32.mrf.mxu0 }
 0x5c7   :  { %v1149_v46 = vpop.eup %1148 }
 0x5c8   :  { %254 = vrot.lane.b32.xlu0 %v1149_v46, %s1174_s0  ;;  %v250_v47 = vadd.f32 1.0, %v1149_v46 }
 0x5ca   :  { %v251_v48 = vmul.f32 0.5, %v250_v47 }
 0x5cc   :  { %v252_v51 = vmul.f32 %v251_v48, %v195_v35 }
 0x63a   :  { %v255_v49 = vpop.permute.xlu0 %254 }
 0x63b   :  { %v257_v50 = vmul.f32 %v255_v49, %v251_v48 }
 0x63d   :  { %259 = vrot.lane.b32.xlu1 %v257_v50, %s1176_s26 }
 0x6af   :  { %v260_v52 = vpop.permute.xlu1 %259 }
 0x6b0   :  { %v262_v53 = vadd.f32 %v260_v52, %v252_v51 }
 0x6b2   :  { %1150 = vtanh.f32 %v262_v53 }
 0x6bf   :  { %v1151_v54 = vpop.eup %1150 }
 0x6c0   :  { %265 = vrot.lane.b32.xlu0 %v1151_v54, %s1174_s0 }
 0x732   :  { %v266_v55 = vpop.permute.xlu0 %265 }
 0x733   :  { %v268_v56 = vmul.f32 %v266_v55, %v251_v48 }
 0x735   :  { %v269_v57 = vpack.c.bf16 %v268_v56, %v268_v56 }
 0x737   :  { %271 = vrot.lane.b32.xlu1 %v269_v57, %s1176_s26 }
 0x7a9   :  { %v272_v58 = vpop.permute.xlu1 %271 }
 0x7aa   :  { %1036 = vmatmul.mubr.msk.bf16.vlgmr.msra.gmra.mxu1 %vm134_vm2, %v272_v58 }
 0x7ab   :  { %1048 = vmatpush3.bf16.msra.mxu1 %v1262_v15  ;;  %1051 = vmatprep.mubr.msk.bf16.mxu1 %vm1173_vm0, %v1172_v0 }
 0x7ac   :  { %1049 = vmatprep.subr.bf16.mxu1 %v1172_v0 }
 0x7af   :  { %1050 = vmatpush3.bf16.msra.mxu1 %v1268_v16 }
 0x7b0   :  { %1063 = vmatprep.subr.bf16.mxu1 %v1172_v0 }
 0x86a   :  { %v310_v59 = vpop.f32.mrf.mxu1 }
 0x86b   :  { %v311_v60 = vadd.f32 %v1255_v4, %v310_v59 }
 0x86c   :  { %v1037_v61 = vpop.f32.mrf.mxu1 }
 0x86d   :  { %1152 = vtanh.f32 %v311_v60 }
 0x86e   :  { %v313_v62 = vpop.f32.mrf.mxu1 }
 0x870   :  { %v1038_v63 = vpop.f32.mrf.mxu1 }
 0x87a   :  { %v1153_v1 = vpop.eup %1152 }
 0x87b   :  { %321 = vrot.lane.b32.xlu0 %v1153_v1, %s1174_s0  ;;  %v317_v2 = vadd.f32 1.0, %v1153_v1 }
 0x87d   :  { %v318_v3 = vmul.f32 0.5, %v317_v2 }
 0x87f   :  { %v319_v7 = vmul.f32 %v318_v3, %v262_v53 }
 0x8ed   :  { %v322_v5 = vpop.permute.xlu0 %321 }
 0x8ee   :  { %v324_v6 = vmul.f32 %v322_v5, %v318_v3 }
 0x8f0   :  { %326 = vrot.lane.b32.xlu1 %v324_v6, %s1176_s26 }
 0x962   :  { %v327_v8 = vpop.permute.xlu1 %326 }
 0x963   :  { %v329_v9 = vadd.f32 %v327_v8, %v319_v7 }
 0x965   :  { %1154 = vtanh.f32 %v329_v9 }
 0x972   :  { %v1155_v10 = vpop.eup %1154 }
 0x973   :  { %332 = vrot.lane.b32.xlu0 %v1155_v10, %s1174_s0 }
 0x9e5   :  { %v333_v11 = vpop.permute.xlu0 %332 }
 0x9e6   :  { %v335_v12 = vmul.f32 %v333_v11, %v318_v3 }
 0x9e8   :  { %v336_v13 = vpack.c.bf16 %v335_v12, %v335_v12 }
 0x9ea   :  { %338 = vrot.lane.b32.xlu1 %v336_v13, %s1176_s26 }
 0xa5c   :  { %v339_v14 = vpop.permute.xlu1 %338 }
 0xa5d   :  { %1044 = vmatmul.mubr.msk.bf16.vlgmr.msra.gmra.mxu0 %vm134_vm2, %v339_v14 }
 0xa5e   :  { %1056 = vmatpush3.bf16.msra.mxu0 %v1262_v15  ;;  %1059 = vmatprep.mubr.msk.bf16.mxu0 %vm1173_vm0, %v1172_v0 }
 0xa5f   :  { %1057 = vmatprep.subr.bf16.mxu0 %v1172_v0 }
 0xa62   :  { %1058 = vmatpush3.bf16.msra.mxu0 %v1268_v16 }
 0xa63   :  { %1071 = vmatprep.subr.bf16.mxu0 %v1172_v0 }
 0xb1d   :  { %v377_v17 = vpop.f32.mrf.mxu0 }
 0xb1e   :  { %v378_v18 = vadd.f32 %v1255_v4, %v377_v17 }
 0xb1f   :  { %v1045_v19 = vpop.f32.mrf.mxu0 }
 0xb20   :  { %1156 = vtanh.f32 %v378_v18 }
 0xb21   :  { %v380_v20 = vpop.f32.mrf.mxu0 }
 0xb23   :  { %v1046_v21 = vpop.f32.mrf.mxu0 }
 0xb2d   :  { %v1157_v22 = vpop.eup %1156 }
 0xb2e   :  { %388 = vrot.lane.b32.xlu0 %v1157_v22, %s1174_s0  ;;  %v384_v23 = vadd.f32 1.0, %v1157_v22  ;;  %v1131_v22 = vld [vmem:[%s1455_s4] sm:$0xff]  }
 0xb30   :  { %v385_v24 = vmul.f32 0.5, %v384_v23 }
 0xb32   :  { %v386_v27 = vmul.f32 %v385_v24, %v329_v9 }
 0xba0   :  { %v389_v25 = vpop.permute.xlu0 %388 }
 0xba1   :  { %v391_v26 = vmul.f32 %v389_v25, %v385_v24  ;;  %v1133_v25 = vld [vmem:[%s1456_s6 + $0x10] sm:$0xff]  }
 0xba3   :  { %393 = vrot.lane.b32.xlu1 %v391_v26, %s1176_s26  ;;  %v1134_v26 = vld [vmem:[%s1456_s6 + $0x8] sm:$0xff]  }
 0xc15   :  { %v394_v28 = vpop.permute.xlu1 %393 }
 0xc16   :  { %v396_v29 = vadd.f32 %v394_v28, %v386_v27 }
 0xc18   :  { %1158 = vtanh.f32 %v396_v29 }
 0xc25   :  { %v1159_v30 = vpop.eup %1158 }
 0xc26   :  { %399 = vrot.lane.b32.xlu0 %v1159_v30, %s1174_s0 }
 0xc98   :  { %v400_v31 = vpop.permute.xlu0 %399 }
 0xc99   :  { %v402_v32 = vmul.f32 %v400_v31, %v385_v24  ;;  %v1132_v24 = vld [vmem:[%s1456_s6 + $0x18] sm:$0xff]   ;;  %v1135_v31 = vld [vmem:[%s1456_s6] sm:$0xff]  }
 0xc9b   :  { %v403_v33 = vpack.c.bf16 %v402_v32, %v402_v32  ;;  %v1136_v32 = vld [vmem:[%s1457_s8 + $0x18] sm:$0xff]  }
 0xc9d   :  { %405 = vrot.lane.b32.xlu1 %v403_v33, %s1176_s26  ;;  %v1137_v33 = vld [vmem:[%s1457_s8 + $0x10] sm:$0xff]  }
 0xd0f   :  { %v406_v34 = vpop.permute.xlu1 %405 }
 0xd10   :  { %1052 = vmatmul.mubr.msk.bf16.vlgmr.msra.gmra.mxu1 %vm134_vm2, %v406_v34  ;;  %v947_v34 = vld [vmem:[%s1458_s5] ss:$0 sm:$0xff] }
 0xd11   :  { %1064 = vmatpush3.bf16.msra.mxu1 %v1262_v15  ;;  %1067 = vmatprep.mubr.msk.bf16.mxu1 %vm1173_vm0, %v1172_v0 }
 0xd12   :  { %1065 = vmatprep.subr.bf16.mxu1 %v1172_v0 }
 0xd15   :  { %1066 = vmatpush3.bf16.msra.mxu1 %v1268_v16 }
 0xd16   :  { %1079 = vmatprep.subr.bf16.mxu1 %v1172_v0 }
 0xdd0   :  { %v444_v35 = vpop.f32.mrf.mxu1 }
 0xdd1   :  { %v445_v36 = vadd.f32 %v1255_v4, %v444_v35 }
 0xdd2   :  { %v1053_v37 = vpop.f32.mrf.mxu1 }
 0xdd3   :  { %1160 = vtanh.f32 %v445_v36 }
 0xdd4   :  { %v447_v38 = vpop.f32.mrf.mxu1 }
 0xdd6   :  { %v1054_v39 = vpop.f32.mrf.mxu1 }
 0xde0   :  { %v1161_v40 = vpop.eup %1160 }
 0xde1   :  { %455 = vrot.lane.b32.xlu0 %v1161_v40, %s1174_s0  ;;  %v451_v15 = vadd.f32 1.0, %v1161_v40 }
 0xde3   :  { %v452_v41 = vmul.f32 0.5, %v451_v15  ;;  %v855_v15 = vld [vmem:[%s1459_s10 + $0x38] sm:$0xff] }
 0xde5   :  { %v453_v44 = vmul.f32 %v452_v41, %v396_v29 }
 0xe53   :  { %v456_v42 = vpop.permute.xlu0 %455 }
 0xe54   :  { %v458_v43 = vmul.f32 %v456_v42, %v452_v41  ;;  %v854_v42 = vld [vmem:[%s1459_s10 + $0x30] sm:$0xff] }
 0xe56   :  { %460 = vrot.lane.b32.xlu1 %v458_v43, %s1176_s26  ;;  %v853_v43 = vld [vmem:[%s1459_s10 + $0x28] sm:$0xff] }
 0xec8   :  { %v461_v16 = vpop.permute.xlu1 %460 }
 0xec9   :  { %v463_v45 = vadd.f32 %v461_v16, %v453_v44  ;;  %v852_v44 = vld [vmem:[%s1459_s10 + $0x20] sm:$0xff]  ;;  %v851_v16 = vld [vmem:[%s1459_s10 + $0x18] sm:$0xff] }
 0xecb   :  { %1162 = vtanh.f32 %v463_v45 }
 0xed8   :  { %v1163_v46 = vpop.eup %1162 }
 0xed9   :  { %466 = vrot.lane.b32.xlu0 %v1163_v46, %s1174_s0  ;;  %v849_v46 = vld [vmem:[%s1459_s10 + $0x8] sm:$0xff] }
 0xf4b   :  { %v467_v47 = vpop.permute.xlu0 %466 }
 0xf4c   :  { %v469_v48 = vmul.f32 %v467_v47, %v452_v41 }
 0xf4e   :  { %v470_v49 = vpack.c.bf16 %v469_v48, %v469_v48  ;;  %v848_v48 = vld [vmem:[%s1459_s10] sm:$0xff] }
 0xf50   :  { %472 = vrot.lane.b32.xlu1 %v470_v49, %s1176_s26 }
 0xfc2   :  { %v473_v50 = vpop.permute.xlu1 %472 }
 0xfc3   :  { %1060 = vmatmul.mubr.msk.bf16.vlgmr.msra.gmra.mxu0 %vm134_vm2, %v473_v50  ;;  %v1138_v50 = vld [vmem:[%s1457_s8 + $0x8] sm:$0xff]  }
 0xfc4   :  { %1075 = vmatprep.mubr.msk.bf16.mxu0 %vm1173_vm0, %v1172_v0 }
0x1083   :  { %v511_v51 = vpop.f32.mrf.mxu0 }
0x1084   :  { %v512_v52 = vadd.f32 %v1255_v4, %v511_v51  ;;  %v1139_v51 = vld [vmem:[%s1457_s8] sm:$0xff]  }
0x1085   :  { %v1061_v53 = vpop.f32.mrf.mxu0 }
0x1086   :  { %1164 = vtanh.f32 %v512_v52  ;;  %v951_v52 = vld [vmem:[%s1460_s7] ss:$0 sm:$0xff] }
0x1087   :  { %v514_v54 = vpop.f32.mrf.mxu0 }
0x1089   :  { %v1062_v55 = vpop.f32.mrf.mxu0 }
0x1093   :  { %v1165_v56 = vpop.eup %1164 }
0x1094   :  { %522 = vrot.lane.b32.xlu0 %v1165_v56, %s1174_s0  ;;  %v518_v57 = vadd.f32 1.0, %v1165_v56 }
0x1096   :  { %v519_v58 = vmul.f32 0.5, %v518_v57 }
0x1098   :  { %v520_v61 = vmul.f32 %v519_v58, %v463_v45  ;;  %v850_v45 = vld [vmem:[%s1459_s10 + $0x10] sm:$0xff] }
0x1106   :  { %v523_v59 = vpop.permute.xlu0 %522 }
0x1107   :  { %v525_v60 = vmul.f32 %v523_v59, %v519_v58 }
0x1109   :  { %527 = vrot.lane.b32.xlu1 %v525_v60, %s1176_s26 }
0x117b   :  { %v528_v62 = vpop.permute.xlu1 %527 }
0x117c   :  { %v530_v63 = vadd.f32 %v528_v62, %v520_v61  ;;  %v957_v61 = vld [vmem:[%s1461_s9] ss:$0 sm:$0xff] }
0x117e   :  { %1166 = vtanh.f32 %v530_v63 }
0x118b   :  { %v1167_v1 = vpop.eup %1166 }
0x118c   :  { %533 = vrot.lane.b32.xlu0 %v1167_v1, %s1174_s0 }
0x11fe   :  { %v534_v2 = vpop.permute.xlu0 %533 }
0x11ff   :  { %v536_v3 = vmul.f32 %v534_v2, %v519_v58 }
0x1201   :  { %v537_v5 = vpack.c.bf16 %v536_v3, %v536_v3 }
0x1203   :  { %539 = vrot.lane.b32.xlu1 %v537_v5, %s1176_s26 }
0x1275   :  { %v540_v6 = vpop.permute.xlu1 %539 }
0x1276   :  { %1068 = vmatmul.mubr.msk.bf16.vlgmr.msra.gmra.mxu1 %vm134_vm2, %v540_v6 }
0x1277   :  { %1087 = vmatprep.mubr.msk.bf16.mxu1 %vm1173_vm0, %v1172_v0  ;;  %1080 = vmatpush3.bf16.msra.mxu1 %v1132_v24 }
0x1278   :  { %1081 = vmatprep.subr.bf16.mxu1 %v1172_v0 }
0x127b   :  { %1082 = vmatpush3.bf16.msra.mxu1 %v1133_v25 }
0x127c   :  { %1083 = vmatprep.subr.bf16.mxu1 %v1172_v0 }
0x127f   :  { %1084 = vmatpush3.bf16.msra.mxu1 %v1134_v26 }
0x1280   :  { %1085 = vmatprep.subr.bf16.mxu1 %v1172_v0 }
0x1283   :  { %1086 = vmatpush3.bf16.msra.mxu1 %v1135_v31 }
0x1284   :  { %1103 = vmatprep.subr.mxu1 %v1172_v0 }
0x1336   :  { %v578_v7 = vpop.f32.mrf.mxu1 }
0x1337   :  { %v579_v8 = vadd.f32 %v1255_v4, %v578_v7  ;;  %v1130_v4 = vld [vmem:[%s1455_s4 + $0x8] sm:$0xff]  }
0x1338   :  { %v1069_v9 = vpop.f32.mrf.mxu1  ;;  %1072 = vmatpush3.bf16.msra.mxu0 %v1130_v4 }
0x1339   :  { %1168 = vtanh.f32 %v579_v8  ;;  %1073 = vmatprep.subr.bf16.mxu0 %v1172_v0 }
0x133a   :  { %v581_v10 = vpop.f32.mrf.mxu1 }
0x133c   :  { %v1070_v11 = vpop.f32.mrf.mxu1  ;;  %1074 = vmatpush3.bf16.msra.mxu0 %v1131_v22 }
0x133d   :  { %1091 = vmatprep.subr.bf16.mxu0 %v1172_v0 }
0x1346   :  { %v1169_v12 = vpop.eup %1168 }
0x1347   :  { %589 = vrot.lane.b32.xlu0 %v1169_v12, %s1174_s0  ;;  %v585_v13 = vadd.f32 1.0, %v1169_v12 }
0x1349   :  { %v586_v14 = vmul.f32 0.5, %v585_v13 }
0x134b   :  { %v587_v19 = vmul.f32 %v586_v14, %v530_v63 }
0x13b9   :  { %v590_v17 = vpop.permute.xlu0 %589 }
0x13ba   :  { %v592_v18 = vmul.f32 %v590_v17, %v586_v14 }
0x13bc   :  { %594 = vrot.lane.b32.xlu1 %v592_v18, %s1176_s26 }
0x142e   :  { %v595_v20 = vpop.permute.xlu1 %594 }
0x142f   :  { %v1353_v21 = vadd.f32 %v595_v20, %v587_v19 }
0x1431   :  { %1170 = vtanh.f32 %v1353_v21 }
0x143e   :  { %v1171_v23 = vpop.eup %1170 }
0x143f   :  { %600 = vrot.lane.b32.xlu0 %v1171_v23, %s1174_s0 }
0x14b1   :  { %v601_v27 = vpop.permute.xlu0 %600 }
0x14b2   :  { %v603_v28 = vmul.f32 %v601_v27, %v586_v14 }
0x14b4   :  { %v604_v29 = vpack.c.bf16 %v603_v28, %v603_v28  ;;  %844 = vrot.lane.b32.xlu0 %v603_v28, %s1176_s26 }
0x14b6   :  { %617 = vrot.lane.b32.xlu1 %v604_v29, %s1176_s26 }
0x1526   :  { %v845_v47 = vpop.permute.xlu0 %844 }
0x1527   :  { %v847_v49 = vsel %vm134_vm2, %v845_v47, %v1353_v21 }
0x1528   :  { %v618_v30 = vpop.permute.xlu1 %617 }
0x1529   :  { %1076 = vmatmul.mubr.msk.bf16.vlgmr.msra.gmra.mxu0 %vm134_vm2, %v618_v30 }
0x152a   :  { %1099 = vmatprep.mubr.msk.bf16.mxu0 %vm1173_vm0, %v1172_v0  ;;  %1092 = vmatpush3.bf16.msra.mxu0 %v1136_v32 }
0x152b   :  { %1093 = vmatprep.subr.bf16.mxu0 %v1172_v0 }
0x152e   :  { %1094 = vmatpush3.bf16.msra.mxu0 %v1137_v33 }
0x152f   :  { %1095 = vmatprep.subr.bf16.mxu0 %v1172_v0 }
0x1532   :  { %1096 = vmatpush3.bf16.msra.mxu0 %v1138_v50 }
0x1533   :  { %1097 = vmatprep.subr.bf16.mxu0 %v1172_v0 }
0x1536   :  { %1098 = vmatpush3.bf16.msra.mxu0 %v1139_v51 }
0x15e9   :  { %v668_v35 = vpop.f32.mrf.mxu0 }
0x15ea   :  { %v669_v36 = vadd.f32 %v947_v34, %v668_v35 }
0x15eb   :  { %v1077_v37 = vpop.f32.mrf.mxu0 }
0x15ec   :  { %v674_v38 = vmax.f32 %v669_v36, 0.0 }
0x15ed   :  { %v671_v39 = vpop.f32.mrf.mxu0 }
0x15ee   :  { %v675_v40 = vpack.c.bf16 %v674_v38, %v674_v38 }
0x15ef   :  { %v1078_v41 = vpop.f32.mrf.mxu0 }
0x15f0   :  { %1088 = vmatmul.mubr.msk.bf16.vlgmr.msra.gmra.mxu1 %vm715_vm3, %v675_v40 }
0x15f1   :  { %1104 = vmatpush3.msra.mxu1 %v855_v15  ;;  %1119 = vmatprep.mubr.msk.f32.mxu1 %vm1173_vm0, %v1172_v0 }
0x15f2   :  { %1105 = vmatprep.subr.mxu1 %v1172_v0 }
0x15f3   :  { %1106 = vmatpush3.msra.mxu1 %v854_v42 }
0x15f4   :  { %1107 = vmatprep.subr.mxu1 %v1172_v0 }
0x15f5   :  { %1108 = vmatpush3.msra.mxu1 %v853_v43 }
0x15f6   :  { %1109 = vmatprep.subr.mxu1 %v1172_v0 }
0x15f7   :  { %1110 = vmatpush3.msra.mxu1 %v852_v44 }
0x15f8   :  { %1111 = vmatprep.subr.mxu1 %v1172_v0 }
0x15f9   :  { %1112 = vmatpush3.msra.mxu1 %v851_v16 }
0x15fa   :  { %1113 = vmatprep.subr.mxu1 %v1172_v0 }
0x15fb   :  { %1114 = vmatpush3.msra.mxu1 %v850_v45 }
0x15fc   :  { %1115 = vmatprep.subr.mxu1 %v1172_v0 }
0x15fd   :  { %1116 = vmatpush3.msra.mxu1 %v849_v46 }
0x15fe   :  { %1117 = vmatprep.subr.mxu1 %v1172_v0 }
0x15ff   :  { %1118 = vmatpush3.msra.mxu1 %v848_v48 }
0x1600   :  { %1120 = vmatmul.mubr.msk.f32.vlgmr.msra.gmra.mxu1 %vm715_vm3, %v847_v49 }
0x16b0   :  { %v753_v53 = vpop.f32.mrf.mxu1 }
0x16b1   :  { %v754_v54 = vadd.f32 %v951_v52, %v753_v53 }
0x16b2   :  { %v1089_v55 = vpop.f32.mrf.mxu1 }
0x16b3   :  { %v759_v56 = vmax.f32 %v754_v54, 0.0 }
0x16b4   :  { %v756_v57 = vpop.f32.mrf.mxu1 }
0x16b5   :  { %v760_v58 = vpack.c.bf16 %v759_v56, %v759_v56 }
0x16b6   :  { %v1090_v59 = vpop.f32.mrf.mxu1 }
0x16b7   :  { %1100 = vmatmul.mubr.msk.bf16.vlgmr.msra.gmra.mxu0 %vm715_vm3, %v760_v58 }
0x16c0   :  { %v925_v60 = vpop.f32.mrf.mxu1 }
0x16c2   :  { %v1121_v0 = vpop.f32.mrf.mxu1 }
0x1777   :  { %v837_v62 = vpop.f32.mrf.mxu0 }
0x1778   :  { %v838_v63 = vadd.f32 %v957_v61, %v837_v62 }
0x1779   :  { %v1101_v1 = vpop.f32.mrf.mxu0 }
0x177a   :  { %v929_v2 = vadd.f32 %v925_v60, %v838_v63 }
0x177b   :  { %v840_v3 = vpop.f32.mrf.mxu0 }
0x177c   :  { %930 = vst [vmem:[%s1462_s11] sm:$0xff] %v929_v2 }
0x177d   :  { %v1102_v5 = vpop.f32.mrf.mxu0 }

</bundles_post_ra>
